<compile_context>
chip_gen: v7x
topology: tpu7x:2x2x1
jax: 0.10.0
libtpu: 0.0.40
codegen_flags: <defaults>
</compile_context>

<pallas_src>
import functools

import jax
import jax.numpy as jnp
from jax.experimental import pallas as pl
from jax.experimental.pallas import tpu as pltpu

SCALE = 8.0   # ECTConfig sigmoid sharpness
LANE = 128    # TPU lane width


# --------------------------- fused WECT + MLP kernel -------------------------
def _wect_mlp_kernel(x_ref, w_ref, vbig_ref, linbig_ref,
                     w1_ref, b1_ref, w2_ref, b2_ref, out_ref, acc_ref):
    # One grid step = (one sample b, one node chunk n).
    #   x      : (tn, D)     node coordinates of this chunk
    #   w      : (tn, 1)     per-node weights of this chunk
    #   vbig   : (D, F)      (SCALE/2)-scaled directions, K-tiled (T-major lanes)
    #   linbig : (1, F)      (SCALE/2)-scaled thresholds, K-repeated (T-major)
    #   w1     : (F, Hp)  b1: (1, Hp)  w2: (Hp, Cp)  b2: (1, Cp)   (128-padded)
    #   out    : (1, Cp)     padded logits of sample b
    #   acc    : (1, F)      f32 VMEM accumulator (persists across node chunks)
    n_id = pl.program_id(1)

    @pl.when(n_id == 0)
    def _init():
        acc_ref[...] = jnp.zeros_like(acc_ref)

    # Node heights for this chunk, directly in the lane-dense T-major (T*K)
    # column layout (matches torch's .view(B, -1)).  MXU matmul, D-contraction.
    h = jnp.dot(x_ref[...], vbig_ref[...],
                preferred_element_type=jnp.float32)                  # (tn, F)

    # sigmoid(SCALE*(lin - h)) via tanh: sigmoid(z) = 0.5*(1 + tanh(z/2));
    # the factor SCALE/2 is folded into vbig / linbig at parameter setup.
    bump = 0.5 + 0.5 * jnp.tanh(linbig_ref[...] - h)                 # (tn, F)

    # Per-node weighting (sublane-broadcast VPU multiply) and node reduction
    # (XLU cross-sublane sum) into the per-sample accumulator.
    acc_ref[...] += jnp.sum(w_ref[...] * bump, axis=0, keepdims=True)  # (1, F)

    @pl.when(n_id == pl.num_programs(1) - 1)
    def _finalize():
        # fused MLP head on the finished WECT feature row: fc2(relu(fc1(feat)))
        feat = acc_ref[...]                                           # (1, F)
        hid = jnp.dot(feat, w1_ref[...],
                      preferred_element_type=jnp.float32) + b1_ref[...]
        hid = jnp.maximum(hid, 0.0)                                   # (1, Hp)
        out_ref[...] = (jnp.dot(hid, w2_ref[...],
                                preferred_element_type=jnp.float32)
                        + b2_ref[...])                                # (1, Cp)


# --------------------------- one-time parameter prep -------------------------
def prepare_wect_params(v, lin, w1, b1, w2, b2):
    """Call ONCE at init (hoisted out of the per-forward path).

    Builds the lane-dense, pre-scaled ECT parameters and the 128-lane-padded
    MLP parameters:
        v_big[:, t*K + k]   = (SCALE/2) * v[:, k]
        lin_big[0, t*K + k] = (SCALE/2) * lin[t]
    """
    D, K = v.shape
    T = lin.shape[0]
    F = T * K
    H = w1.shape[1]
    C = w2.shape[1]
    half = SCALE * 0.5

    v_big = (half * jnp.tile(v, (1, T))).astype(jnp.float32)             # (D, F)
    lin_big = (half * jnp.repeat(lin.reshape(-1), K))[None, :].astype(jnp.float32)

    # Pad hidden / class dims up to 128 lanes -> unmasked stores, full MXU width.
    hp = ((H + LANE - 1) // LANE) * LANE
    cp = ((C + LANE - 1) // LANE) * LANE
    w1p = jnp.zeros((F, hp), jnp.float32).at[:, :H].set(w1)
    b1p = jnp.zeros((1, hp), jnp.float32).at[:, :H].set(b1.reshape(1, H))
    w2p = jnp.zeros((hp, cp), jnp.float32).at[:H, :C].set(w2)
    b2p = jnp.zeros((1, cp), jnp.float32).at[:, :C].set(b2.reshape(1, C))
    return (v_big, lin_big, w1p, b1p, w2p, b2p)


def _pick_node_tile(n):
    """Default node tile: multiple of 8, divides N, big enough to amortize the
    ~0.35us/step grid overhead.  Capped at 512 rows so the double-buffered
    (tn, F) bump/x tiles stay far under the scoped VMEM budget on every
    generation (v7x has only 64 MiB physical VMEM vs 128 MiB on v5e/v6e)."""
    for t in (512, 256, 128, 64, 32, 16, 8):
        if t <= n and n % t == 0:
            return t
    return n


# ------------------------------- full forward --------------------------------
def wect_classifier_forward(x, w, v_big, lin_big, w1p, b1p, w2p, b2p,
                            *, num_classes, node_tile=None):
    """x:(B,N,D) dense-batched nodes, w:(B,N,1) node weights, rest from
    prepare_wect_params().  Returns logits (B, num_classes)."""
    B, N, D = x.shape
    F = v_big.shape[1]
    Hp = w1p.shape[1]
    Cp = w2p.shape[1]

    tn = node_tile if node_tile is not None else _pick_node_tile(N)
    assert N % tn == 0 and (tn % 8 == 0 or tn == N), (N, tn)

    grid = (B, N // tn)   # (batch: parallel, node chunks: arbitrary/reduction)

    out = pl.pallas_call(
        _wect_mlp_kernel,
        out_shape=jax.ShapeDtypeStruct((B, 1, Cp), jnp.float32),
        grid=grid,
        in_specs=[
            pl.BlockSpec((None, tn, D), lambda b, n: (b, n, 0)),    # x chunk
            pl.BlockSpec((None, tn, 1), lambda b, n: (b, n, 0)),    # w chunk
            pl.BlockSpec((D, F), lambda b, n: (0, 0)),              # v_big (resident)
            pl.BlockSpec((1, F), lambda b, n: (0, 0)),              # lin_big
            pl.BlockSpec((F, Hp), lambda b, n: (0, 0)),             # w1 (padded)
            pl.BlockSpec((1, Hp), lambda b, n: (0, 0)),             # b1
            pl.BlockSpec((Hp, Cp), lambda b, n: (0, 0)),            # w2
            pl.BlockSpec((1, Cp), lambda b, n: (0, 0)),             # b2
        ],
        out_specs=pl.BlockSpec((None, 1, Cp), lambda b, n: (b, 0, 0)),
        scratch_shapes=[pltpu.VMEM((1, F), jnp.float32)],           # per-sample acc
        compiler_params=pltpu.CompilerParams(
            dimension_semantics=("parallel", "arbitrary"),
            vmem_limit_bytes=32 * 1024 * 1024,   # safe on v5e/v6e/v7x
        ),
    )(x, w, v_big, lin_big, w1p, b1p, w2p, b2p)

    return out.reshape(B, Cp)[:, :num_classes]


if __name__ == "__main__":
    # ECTConfig-like sizes (small).
    B, N, D = 2, 32, 3          # batch, nodes per complex, ambient dim
    K = 8                       # num_directions
    T = 16                      # bump_steps
    HIDDEN = 32
    NUM_CLASSES = 4
    F = K * T                   # fc1 in_features = num_directions * bump_steps (=128)
    NODE_TILE = 16              # 2 node chunks/sample -> exercises the reduction path

    key = jax.random.PRNGKey(0)
    kx, kw, kv, k1, k2, k3, k4 = jax.random.split(key, 7)

    # inputs (dense-batched weighted point clouds)
    x = jax.random.normal(kx, (B, N, D), dtype=jnp.float32)
    w = jax.random.uniform(kw, (B, N, 1), dtype=jnp.float32)

    # fixed ECT parameters: unit directions + threshold grid
    v = jax.random.normal(kv, (D, K), dtype=jnp.float32)
    v = v / jnp.linalg.norm(v, axis=0, keepdims=True)
    lin = jnp.linspace(-2.0, 2.0, T, dtype=jnp.float32).reshape(T, 1)

    # MLP parameters (deterministic, PyTorch Linear-style uniform init)
    lim1 = 1.0 / jnp.sqrt(F)
    w1 = jax.random.uniform(k1, (F, HIDDEN), jnp.float32, -lim1, lim1)
    b1 = jax.random.uniform(k2, (1, HIDDEN), jnp.float32, -lim1, lim1)
    lim2 = 1.0 / jnp.sqrt(HIDDEN)
    w2 = jax.random.uniform(k3, (HIDDEN, NUM_CLASSES), jnp.float32, -lim2, lim2)
    b2 = jax.random.uniform(k4, (1, NUM_CLASSES), jnp.float32, -lim2, lim2)

    # One-time parameter re-layout (hoisted out of the per-call path).
    params = prepare_wect_params(v, lin, w1, b1, w2, b2)

    fwd = jax.jit(functools.partial(
        wect_classifier_forward, num_classes=NUM_CLASSES, node_tile=NODE_TILE))
    logits = jax.block_until_ready(fwd(x, w, *params))
    assert logits.shape == (B, NUM_CLASSES)

    # pure-JAX reference (original sigmoid formulation, torch T-major flatten)
    heights = jnp.einsum("bnd,dk->bnk", x, v)
    bump = jax.nn.sigmoid(SCALE * (lin[None, :, :, None] - heights[:, None, :, :]))
    ecc = jnp.sum(bump * w[:, None, :, :], axis=2)                    # (B, T, K)
    feat = ecc.reshape(B, -1)
    ref = jnp.maximum(feat @ w1 + b1, 0.0) @ w2 + b2
    assert jnp.allclose(logits, ref, atol=1e-4, rtol=1e-4)

    print("KERNEL_OK")
</pallas_src>

<mosaic_0001>
module attributes {stable_mosaic.version = 11 : i64} {
  func.func @_wect_mlp_kernel(%arg0: i32, %arg1: i32, %arg2: memref<1x16x3xf32, #tpu.memory_space<vmem>>, %arg3: memref<1x16x1xf32, #tpu.memory_space<vmem>>, %arg4: memref<3x128xf32, #tpu.memory_space<vmem>>, %arg5: memref<1x128xf32, #tpu.memory_space<vmem>>, %arg6: memref<128x128xf32, #tpu.memory_space<vmem>>, %arg7: memref<1x128xf32, #tpu.memory_space<vmem>>, %arg8: memref<128x128xf32, #tpu.memory_space<vmem>>, %arg9: memref<1x128xf32, #tpu.memory_space<vmem>>, %arg10: memref<1x1x128xf32, #tpu.memory_space<vmem>>, %arg11: memref<1x128xf32, #tpu.memory_space<vmem>>) attributes {dimension_semantics = [#tpu.dimension_semantics<parallel>, #tpu.dimension_semantics<arbitrary>], iteration_bounds = array<i64: 2, 2>, scalar_prefetch = 0 : i64, scratch_operands = 1 : i64, tpu.core_type = #tpu.core_type<tc>, window_params = [{transform_indices = @transform_0, window_bounds = array<i64: 1, 16, 3>}, {transform_indices = @transform_1, window_bounds = array<i64: 1, 16, 1>}, {pipeline_mode = #tpu.pipeline_mode<synchronous>, transform_indices = @transform_2, window_bounds = array<i64: 3, 128>}, {pipeline_mode = #tpu.pipeline_mode<synchronous>, transform_indices = @transform_3, window_bounds = array<i64: 1, 128>}, {pipeline_mode = #tpu.pipeline_mode<synchronous>, transform_indices = @transform_4, window_bounds = array<i64: 128, 128>}, {pipeline_mode = #tpu.pipeline_mode<synchronous>, transform_indices = @transform_5, window_bounds = array<i64: 1, 128>}, {pipeline_mode = #tpu.pipeline_mode<synchronous>, transform_indices = @transform_6, window_bounds = array<i64: 128, 128>}, {pipeline_mode = #tpu.pipeline_mode<synchronous>, transform_indices = @transform_7, window_bounds = array<i64: 1, 128>}, {transform_indices = @transform_8, window_bounds = array<i64: 1, 1, 128>}]} {
    %c0_i32 = arith.constant 0 : i32
    %0 = arith.cmpi eq, %arg1, %c0_i32 : i32
    %1 = arith.extui %0 : i1 to i32
    %c0_i32_0 = arith.constant 0 : i32
    %2 = arith.cmpi ne, %1, %c0_i32_0 : i32
    scf.if %2 {
      %cst_18 = arith.constant 0.000000e+00 : f32
      %27 = vector.broadcast %cst_18 : f32 to vector<1x128xf32>
      %c0_19 = arith.constant 0 : index
      %c0_20 = arith.constant 0 : index
      %28 = vector.load %arg11[%c0_19, %c0_20] : memref<1x128xf32, #tpu.memory_space<vmem>>, vector<1x128xf32>
      tpu.vector_store %arg11[%c0_19, %c0_20], %27 {strides = array<i32>} : memref<1x128xf32, #tpu.memory_space<vmem>>, vector<1x128xf32>,
    } else {
    }
    %c0 = arith.constant 0 : index
    %c0_1 = arith.constant 0 : index
    %c0_2 = arith.constant 0 : index
    %3 = vector.load %arg2[%c0, %c0_1, %c0_2] : memref<1x16x3xf32, #tpu.memory_space<vmem>>, vector<1x16x3xf32>
    %4 = vector.shape_cast %3 : vector<1x16x3xf32> to vector<16x3xf32>
    %c0_3 = arith.constant 0 : index
    %c0_4 = arith.constant 0 : index
    %5 = vector.load %arg4[%c0_3, %c0_4] : memref<3x128xf32, #tpu.memory_space<vmem>>, vector<3x128xf32>
    %cst = arith.constant dense<0.000000e+00> : vector<16x128xf32>
    %6 = tpu.matmul %4, %5, %cst {dimension_numbers = #tpu.dot_dimension_numbers<[1], [0], [0], [1], [0, 0, 1, 1], [], []>} : vector<16x3xf32>, vector<3x128xf32>, vector<16x128xf32> -> vector<16x128xf32>
    %c0_5 = arith.constant 0 : index
    %c0_6 = arith.constant 0 : index
    %7 = vector.load %arg5[%c0_5, %c0_6] : memref<1x128xf32, #tpu.memory_space<vmem>>, vector<1x128xf32>
    %8 = vector.broadcast %7 : vector<1x128xf32> to vector<16x128xf32>
    %9 = arith.subf %8, %6 : vector<16x128xf32>
    %10 = math.tanh %9 : vector<16x128xf32>
    %cst_7 = arith.constant 5.000000e-01 : f32
    %11 = vector.broadcast %cst_7 : f32 to vector<16x128xf32>
    %12 = arith.mulf %11, %10 : vector<16x128xf32>
    %cst_8 = arith.constant 5.000000e-01 : f32
    %13 = vector.broadcast %cst_8 : f32 to vector<16x128xf32>
    %14 = arith.addf %13, %12 : vector<16x128xf32>
    %c0_9 = arith.constant 0 : index
    %c0_10 = arith.constant 0 : index
    %15 = vector.load %arg11[%c0_9, %c0_10] : memref<1x128xf32, #tpu.memory_space<vmem>>, vector<1x128xf32>
    %c0_11 = arith.constant 0 : index
    %c0_12 = arith.constant 0 : index
    %c0_13 = arith.constant 0 : index
    %16 = vector.load %arg3[%c0_11, %c0_12, %c0_13] : memref<1x16x1xf32, #tpu.memory_space<vmem>>, vector<1x16x1xf32>
    %17 = vector.shape_cast %16 : vector<1x16x1xf32> to vector<16x1xf32>
    %18 = vector.broadcast %17 : vector<16x1xf32> to vector<16x128xf32>
    %19 = arith.mulf %18, %14 : vector<16x128xf32>
    %cst_14 = arith.constant dense<0.000000e+00> : vector<128xf32>
    %20 = vector.multi_reduction <add>, %19, %cst_14 [0] : vector<16x128xf32> to vector<128xf32>
    %21 = vector.shape_cast %20 : vector<128xf32> to vector<1x128xf32>
    %22 = arith.addf %15, %21 : vector<1x128xf32>
    %c0_15 = arith.constant 0 : index
    %c0_16 = arith.constant 0 : index
    %23 = vector.load %arg11[%c0_15, %c0_16] : memref<1x128xf32, #tpu.memory_space<vmem>>, vector<1x128xf32>
    tpu.vector_store %arg11[%c0_15, %c0_16], %22 {strides = array<i32>} : memref<1x128xf32, #tpu.memory_space<vmem>>, vector<1x128xf32>,
    %c1_i32 = arith.constant 1 : i32
    %24 = arith.cmpi eq, %arg1, %c1_i32 : i32
    %25 = arith.extui %24 : i1 to i32
    %c0_i32_17 = arith.constant 0 : i32
    %26 = arith.cmpi ne, %25, %c0_i32_17 : i32
    scf.if %26 {
      %c0_18 = arith.constant 0 : index
      %c0_19 = arith.constant 0 : index
      %27 = vector.load %arg11[%c0_18, %c0_19] : memref<1x128xf32, #tpu.memory_space<vmem>>, vector<1x128xf32>
      %c0_20 = arith.constant 0 : index
      %c0_21 = arith.constant 0 : index
      %28 = vector.load %arg6[%c0_20, %c0_21] : memref<128x128xf32, #tpu.memory_space<vmem>>, vector<128x128xf32>
      %cst_22 = arith.constant dense<0.000000e+00> : vector<1x128xf32>
      %29 = tpu.matmul %27, %28, %cst_22 {dimension_numbers = #tpu.dot_dimension_numbers<[1], [0], [0], [1], [0, 0, 1, 1], [], []>} : vector<1x128xf32>, vector<128x128xf32>, vector<1x128xf32> -> vector<1x128xf32>
      %c0_23 = arith.constant 0 : index
      %c0_24 = arith.constant 0 : index
      %30 = vector.load %arg7[%c0_23, %c0_24] : memref<1x128xf32, #tpu.memory_space<vmem>>, vector<1x128xf32>
      %31 = arith.addf %29, %30 : vector<1x128xf32>
      %cst_25 = arith.constant 0.000000e+00 : f32
      %32 = vector.broadcast %cst_25 : f32 to vector<1x128xf32>
      %33 = arith.maximumf %31, %32 : vector<1x128xf32>
      %c0_26 = arith.constant 0 : index
      %c0_27 = arith.constant 0 : index
      %34 = vector.load %arg8[%c0_26, %c0_27] : memref<128x128xf32, #tpu.memory_space<vmem>>, vector<128x128xf32>
      %cst_28 = arith.constant dense<0.000000e+00> : vector<1x128xf32>
      %35 = tpu.matmul %33, %34, %cst_28 {dimension_numbers = #tpu.dot_dimension_numbers<[1], [0], [0], [1], [0, 0, 1, 1], [], []>} : vector<1x128xf32>, vector<128x128xf32>, vector<1x128xf32> -> vector<1x128xf32>
      %c0_29 = arith.constant 0 : index
      %c0_30 = arith.constant 0 : index
      %36 = vector.load %arg9[%c0_29, %c0_30] : memref<1x128xf32, #tpu.memory_space<vmem>>, vector<1x128xf32>
      %37 = arith.addf %35, %36 : vector<1x128xf32>
      %c0_31 = arith.constant 0 : index
      %c0_32 = arith.constant 0 : index
      %c0_33 = arith.constant 0 : index
      %38 = vector.load %arg10[%c0_31, %c0_32, %c0_33] : memref<1x1x128xf32, #tpu.memory_space<vmem>>, vector<1x1x128xf32>
      %39 = vector.shape_cast %38 : vector<1x1x128xf32> to vector<1x128xf32>
      %40 = vector.shape_cast %37 : vector<1x128xf32> to vector<1x1x128xf32>
      tpu.vector_store %arg10[%c0_31, %c0_32, %c0_33], %40 {strides = array<i32>} : memref<1x1x128xf32, #tpu.memory_space<vmem>>, vector<1x1x128xf32>,
    } else {
    }
    return
  }
  func.func @transform_0(%arg0: i32, %arg1: i32) -> (i32, i32, i32) {
    %c0_i32 = arith.constant 0 : i32
    %c0_i32_0 = arith.constant 0 : i32
    return %arg0, %arg1, %c0_i32 : i32, i32, i32
  }
  func.func @transform_1(%arg0: i32, %arg1: i32) -> (i32, i32, i32) {
    %c0_i32 = arith.constant 0 : i32
    %c0_i32_0 = arith.constant 0 : i32
    return %arg0, %arg1, %c0_i32 : i32, i32, i32
  }
  func.func @transform_2(%arg0: i32, %arg1: i32) -> (i32, i32) {
    %c0_i32 = arith.constant 0 : i32
    %c0_i32_0 = arith.constant 0 : i32
    %c0_i32_1 = arith.constant 0 : i32
    return %c0_i32, %c0_i32_0 : i32, i32
  }
  func.func @transform_3(%arg0: i32, %arg1: i32) -> (i32, i32) {
    %c0_i32 = arith.constant 0 : i32
    %c0_i32_0 = arith.constant 0 : i32
    %c0_i32_1 = arith.constant 0 : i32
    return %c0_i32, %c0_i32_0 : i32, i32
  }
  func.func @transform_4(%arg0: i32, %arg1: i32) -> (i32, i32) {
    %c0_i32 = arith.constant 0 : i32
    %c0_i32_0 = arith.constant 0 : i32
    %c0_i32_1 = arith.constant 0 : i32
    return %c0_i32, %c0_i32_0 : i32, i32
  }
  func.func @transform_5(%arg0: i32, %arg1: i32) -> (i32, i32) {
    %c0_i32 = arith.constant 0 : i32
    %c0_i32_0 = arith.constant 0 : i32
    %c0_i32_1 = arith.constant 0 : i32
    return %c0_i32, %c0_i32_0 : i32, i32
  }
  func.func @transform_6(%arg0: i32, %arg1: i32) -> (i32, i32) {
    %c0_i32 = arith.constant 0 : i32
    %c0_i32_0 = arith.constant 0 : i32
    %c0_i32_1 = arith.constant 0 : i32
    return %c0_i32, %c0_i32_0 : i32, i32
  }
  func.func @transform_7(%arg0: i32, %arg1: i32) -> (i32, i32) {
    %c0_i32 = arith.constant 0 : i32
    %c0_i32_0 = arith.constant 0 : i32
    %c0_i32_1 = arith.constant 0 : i32
    return %c0_i32, %c0_i32_0 : i32, i32
  }
  func.func @transform_8(%arg0: i32, %arg1: i32) -> (i32, i32, i32) {
    %c0_i32 = arith.constant 0 : i32
    %c0_i32_0 = arith.constant 0 : i32
    %c0_i32_1 = arith.constant 0 : i32
    return %arg0, %c0_i32, %c0_i32_0 : i32, i32, i32
  }
}

</mosaic_0001>

<bundles_post_ra>
// kernel: wect_classifier_forward.1
= control target key start
LH: loop header
LB: loop body
LE: loop exit
PB: predicated region body
PF: predicated region fallthrough
CT: control target
= control target key end

     0   :  { %s1523_s0 = inlined_call_operand.vmem [shape: f32[2,32,3], index: 0, kind: input, shape index: {}]   ;;  %s1524_s1 = inlined_call_operand.vmem [shape: f32[2,32,1], index: 1, kind: input, shape index: {}]   ;;  %s1525_s2 = inlined_call_operand.vmem [shape: f32[3,128], index: 2, kind: input, shape index: {}]   ;;  %s1526_s3 = inlined_call_operand.vmem [shape: f32[1,128], index: 3, kind: input, shape index: {}]   ;;  %s1527_s4 = inlined_call_operand.vmem [shape: f32[128,128], index: 4, kind: input, shape index: {}]   ;;  %s1528_s5 = inlined_call_operand.vmem [shape: f32[1,128], index: 5, kind: input, shape index: {}]   ;;  %s1529_s6 = inlined_call_operand.hbm [shape: f32[128,128], index: 6, kind: input, shape index: {}]   ;;  %s1530_s7 = inlined_call_operand.vmem [shape: f32[1,128], index: 7, kind: input, shape index: {}]   ;;  %s1531_s8 = inlined_call_operand.hbm [shape: f32[2,1,128], index: 8, kind: output, shape index: {}]  }
   0x1   :  { %1538 = sst [smem:[#allocation12_spill]] %s1529_s6 }
   0x2   :  { %13 = vsyncpa [#allocation4], 0 }
   0x3   :  { %14 = vsyncpa [#allocation5], 0 }
   0x4   :  { %16 = vsyncpa [#allocation5 + $0x1], 0  ;;  %s1269_s27 = smov 0   ;;  %s1271_s28 = smov 0  }
   0x5   :  { %s1273_s29 = smov 0   ;;  %s1275_s30 = smov 0  }
   0x6   :  { %s1277_s9 = smov 0   ;;  %s1279_s10 = smov 0  }
   0x7   :  { %s1281_s11 = smov 0   ;;  %s1283_s12 = smov 0  }
   0x8 LB: > { %1539 = sst [smem:[#allocation9_spill]] %s1209_s11  ;;  %s811_s13 = sadd.s32 4294967295, %s1213_s12   ;;  %s1213_s12 = sphi %s1283_s12, %s22_s12   ;;  %s1209_s11 = sphi %s1281_s11, %s1554_s11   ;;  %s1205_s10 = sphi %s1279_s10, %s1559_s10   ;;  %s1201_s9 = sphi %s1277_s9, %s1552_s9   ;;  %s1197_s30 = sphi %s1275_s30, %s1558_s30   ;;  %s1193_s29 = sphi %s1273_s29, %s1557_s29   ;;  %s1189_s28 = sphi %s1271_s28, %s1556_s28   ;;  %s1185_s27 = sphi %s1269_s27, %s1555_s27  }
   0x9   : > { %s812_s14 = sadd.s32 4294967294, %s1213_s12   ;;  %s31_s15 = sadd.s32 1, %s1205_s10 }
   0xa   : > { %s34_s16 = sadd.s32 1, %s1209_s11  ;;  %p32_p0 = scmp.ge.s32.totalorder %s31_s15, 2 }
   0xb   : > { %s223_s17 = sadd.s32 1, %s1193_s29  ;;  %p233_p1 = scmp.ne.s32.totalorder %s1193_s29, %s1189_s28 }
   0xc   : > { %p234_p2 = scmp.eq.s32.totalorder %s811_s13, 3  ;;  %s1561_s15 = smov (%p32_p0, %s31_s15), 0 }
   0xd   : > { %1540 = sst [smem:[#allocation10_spill]] %s1561_s15  ;;  %s1563_s16 = smov (!%p32_p0, %s34_s16), %s1209_s11 }
   0xe   : > { %p1319_p3 = por %p234_p2, %p233_p1  ;;  %p239_p4 = scmp.ne.s32.totalorder %s1189_s28, %s1185_s27 }
   0xf   : > { %p36_p5 = scmp.ge.s32.totalorder %s1563_s16, 2  ;;  %p240_p6 = scmp.eq.s32.totalorder %s812_s14, 3 }
  0x10   : > { %s1541_s18 = scalar_select %p1319_p3, 1, 0 }
  0x11   : > { %p813_p7 = scmp.ge.s32.totalorder %s1213_s12, 1  ;;  %p247_p8 = scmp.lt.s32.totalorder %s1213_s12, 5 }
  0x12   : > { %s1565_s16 = smov (%p36_p5, %s1563_s16), 0  ;;  %p1329_p9 = por %p240_p6, %p239_p4 }
  0x13   : > { %1542 = sst [smem:[#allocation11_spill]] %s1565_s16  ;;  %p1333_p10 = pnand %p813_p7, %p247_p8 }
  0x14   : > { %s1543_s19 = scalar_select %p1329_p9, 1, 0 }
  0x15   : > { %s1544_s20 = scalar_select %p1333_p10, 1, 0 }
  0x16   : > { %s220_s21 = ssub.s32 %s1209_s11, %s1565_s16  ;;  %p999_p12 = pneg %p1333_p10 }
  0x17   : > { %p221_p11 = scmp.eq.s32.totalorder %s220_s21, 0  ;;  %p1341_p13 = scmp.eq.s32.totalorder %s811_s13, 0 }
  0x18   : > { %s1215_s24 = smov [#allocation3]   ;;  %s1547_s6 = sld [smem:[#allocation12_spill]] }
  0x19   : > { %s1545_s22 = scalar_select %p1341_p13, 1, 0 }
  0x1a   : > { %s1346_s23 = scalar_select %p221_p11, %s1193_s29, %s223_s17  }
  0x1b   : > { %s271_s25 = sshll.u32 %s1215_s24, 4  ;;  %p1350_p0 = pnand %p1341_p13, %p999_p12  ;;  %s272_s25 = int_to_ptr.vmem [resolvable:$true] %s271_s25 }
  0x1d   : > { %p1089_p2 = pneg %p1350_p0 }
  0x1e   : > { %s1087_s16 = scalar_lea.hbm %s1547_s6, 2048 }
  0x1f   : > { %p1088_p1 = scmp.ne.s32.totalorder %s1547_s6, %s1087_s16  ;;  %p1094_p6 = scmp.lt.u32.totalorder %s1087_s16, %s1547_s6 }
  0x21   : > { %p1090_p4 = pnand %p1089_p2, %p1088_p1 }
  0x23   : > { %p1091_p5 = pneg %p1090_p4 }
  0x25   : > { %p1096_p7 = pnand %p1094_p6, %p1091_p5 }
  0x27   : > { %1099 = shalt.err (!%p1096_p7)
}
  0x28   : > { %s1100_s11 = scalar_lea.vmem %s272_s25, 2048  ;;  %p1108_p9 = scmp.lt.s32.totalorder %s272_s25, %s272_s25 }
  0x29   : > { %p1101_p8 = scmp.ne.s32.totalorder %s272_s25, %s1100_s11  ;;  %p1109_p3 = scmp.lt.s32.totalorder %s1100_s11, %s1100_s11 }
  0x2b   : > { %p1103_p11 = pnand %p1101_p8, %p1089_p2  ;;  %p1110_p13 = por %p1109_p3, %p1108_p9 }
  0x2d   : > { %p1104_p12 = pneg %p1103_p11 }
  0x2f   : > { %p1111_p10 = pnand %p1110_p13, %p1104_p12 }
  0x31   : > { %1114 = shalt.err (!%p1111_p10)
}
  0x32   : > { %s1216_s15 = smov 128   ;;  %s1217_s14 = smov 8  }
  0x33   : > { %1002 = dma.hbm_to_vmem [thread:$0]  (!%p1350_p0), %s1547_s6, 2048, %s272_s25, [#allocation4], %s1216_s15, %s1216_s15, %s1217_s14  }
  0x34   : > { %p1548_p1 = scmp.ne.s32.totalorder %s1544_s20, 0 }
  0x35   : > { %p1549_p4 = scmp.ne.s32.totalorder (!%p1548_p1), %s1545_s22, 0 }
  0x36   : > { %316 = sbr.rel (%p1548_p1) target bundleno = 788 (0x314), region = 52 }
  0x3d   : > { %1176 = dma.done.wait (%p1549_p4), [#allocation4], 2048  }
  0x3e   : > { %1178 = vsyncadd (%p1549_p4), [#allocation4], 4294965248  ;;  %s360_s11 = sand.u32 1, %s1189_s28   ;;  %s818_s16 = sshll.u32 %s1197_s30, 1 }
  0x3f   : > { %p363_p3 = scmp.lt.s32.totalorder %s1201_s9, 1  ;;  %p365_p9 = scmp.lt.s32.totalorder %s818_s16, 3 }
  0x40   : > { %s1388_s6 = scalar_lea.vmem [#allocation6], %s360_s11  ;;  %p824_p10 = scmp.ne.s32.totalorder %s1197_s30, 0 }
  0x41   : > { %s364_s26 = scalar_select %p363_p3, %s1201_s9, 1 }
  0x42   : > { %s1567_s16 = smov (!%p365_p9, %s818_s16), 3  ;;  %385 = sbr.rel (%p824_p10) target bundleno = 73 (0x49), region = 60 }
  0x43   : > { %s819_s25 = sshll.u32 %s364_s26, 2  ;;  %v1218_v0 = vmov (!%p824_p10), 0.0  }
  0x44   : > { %s368_s20 = sadd.s32 %s819_s25, %s1567_s16  ;;  %386 = vst [vmem:[#allocation2] sm:$0x1] (!%p824_p10), %v1218_v0 }
  0x45   : > { %s820_s17 = sshll.u32 %s368_s20, 3 }
  0x46   : > { %s370_s14 = scalar_lea.vmem %s1523_s0, %s820_s17  ;;  %s380_s13 = scalar_lea.vmem %s1524_s1, %s820_s17 }
  0x49 PF: > { %v389_v1 = vld [vmem:[%s1525_s2] sm:$0x7]  ;;  %vm397_vm0 = vcmask 1042432   ;;  %vm390_vm1 = vcmask 23552   ;;  %v388_v3 = vld [vmem:[%s370_s14 + $0x8] sm:$0xff]  ;;  %v1219_v5 = vmov 0  }
  0x4a   : > { %v387_v2 = vld [vmem:[%s370_s14] sm:$0xff]  ;;  %870 = vmatprep.subr.msk.mxu0 %vm397_vm0, %v389_v1  ;;  %1082 = vset.pattern.permute.xlu0 %v1219_v5  ;;  %v493_v6 = vld [vmem:[%s380_s13 + $0x8] sm:$0xff]  ;;  %p829_p13 = scmp.ne.s32.totalorder %s1197_s30, 1 }
  0x4b   : > { %872 = vmatprep.mubr.msk.f32.mxu0 %vm390_vm1, %v387_v2  ;;  %v492_v4 = vld [vmem:[%s380_s13] sm:$0xff]  ;;  %871 = vmatpush3.msk.msra.mxu0 %vm397_vm0, %v389_v1  ;;  %v521_v32 = vld [vmem:[%s1527_s4 + $0x8] sm:$0xff] (!%p829_p13)  ;;  %v522_v33 = vld [vmem:[%s1527_s4 + $0x10] sm:$0xff] (!%p829_p13)  ;;  %v1220_v34 = vmov (!%p829_p13), 0.0|0.0   ;;  %vm1221_vm2 = vmmov (!%p829_p13), 0   ;;  %v1222_v37 = vmov (!%p829_p13), 0.0  }
  0x4c   : > { %873 = vmatmul.mubr.msk.f32.vlgmr.msra.gmra.mrb[0].mxu0 %vm390_vm1, %v388_v3  ;;  %496 = vperm.xlu0 %1082, %v492_v4   ;;  %v828_v7 = vld [vmem:[%s1526_s3] ss:$0 sm:$0xff]  ;;  %v523_v36 = vld [vmem:[%s1527_s4 + $0x18] sm:$0xff] (!%p829_p13)  ;;  %v525_v40 = vld [vmem:[%s1527_s4 + $0x28] sm:$0xff] (!%p829_p13) }
  0x4d   : > { %v491_v28 = vld [vmem:[#allocation2] sm:$0x1]  ;;  %945 = vmatprep.subr.bf16.mxu0 (!%p829_p13), %v1220_v34  ;;  %907 = vmatprep.mubr.msk.f32.mxu0 (!%p829_p13), %vm1221_vm2, %v1222_v37  ;;  %v949_v38 = vpack.c.bf16 (!%p829_p13), %v523_v36, %v522_v33  ;;  %v608_v41 = vld [vmem:[#allocation3] sm:$0xff] (!%p829_p13)  ;;  %v609_v42 = vld [vmem:[#allocation3 + $0x8] sm:$0xff] (!%p829_p13) }
  0x4e   : > { %v520_v31 = vld [vmem:[%s1527_s4] sm:$0xff] (!%p829_p13)  ;;  %969 = vmatprep.subr.bf16.mxu1 (!%p829_p13), %v1220_v34  ;;  %942 = vmatprep.mubr.msk.f32.mxu1 (!%p829_p13), %vm1221_vm2, %v1222_v37  ;;  %v610_v43 = vld [vmem:[#allocation3 + $0x10] sm:$0xff] (!%p829_p13)  ;;  %v970_v46 = vpack.c.bf16 (!%p829_p13), %v609_v42, %v608_v41  ;;  %v613_v51 = vld [vmem:[#allocation3 + $0x28] sm:$0xff] (!%p829_p13) }
  0x4f   : > { %v946_v35 = vpack.c.bf16 (!%p829_p13), %v521_v32, %v520_v31  ;;  %v524_v39 = vld [vmem:[%s1527_s4 + $0x20] sm:$0xff] (!%p829_p13)  ;;  %v526_v47 = vld [vmem:[%s1527_s4 + $0x30] sm:$0xff] (!%p829_p13)  ;;  %v527_v48 = vld [vmem:[%s1527_s4 + $0x38] sm:$0xff] (!%p829_p13) }
  0x50   : > { %501 = vperm.xlu0 %1082, %v493_v6   ;;  %v611_v44 = vld [vmem:[#allocation3 + $0x18] sm:$0xff] (!%p829_p13)  ;;  %v952_v45 = vpack.c.bf16 (!%p829_p13), %v525_v40, %v524_v39  ;;  %971 = vmatpush3.bf16.msra.mxu1 (!%p829_p13), %v970_v46  ;;  %v612_v50 = vld [vmem:[#allocation3 + $0x20] sm:$0xff] (!%p829_p13)  ;;  %v955_v52 = vpack.c.bf16 (!%p829_p13), %v527_v48, %v526_v47  ;;  %v614_v56 = vld [vmem:[#allocation3 + $0x30] sm:$0xff] (!%p829_p13) }
  0x51   : > { %947 = vmatpush3.bf16.msra.mxu0 (!%p829_p13), %v946_v35  ;;  %v973_v49 = vpack.c.bf16 (!%p829_p13), %v611_v44, %v610_v43  ;;  %972 = vmatprep.subr.bf16.mxu1 (!%p829_p13), %v1220_v34  ;;  %v528_v53 = vld [vmem:[%s1527_s4 + $0x40] sm:$0xff] (!%p829_p13)  ;;  %v529_v54 = vld [vmem:[%s1527_s4 + $0x48] sm:$0xff] (!%p829_p13)  ;;  %v976_v55 = vpack.c.bf16 (!%p829_p13), %v613_v51, %v612_v50  ;;  %v530_v59 = vld [vmem:[%s1527_s4 + $0x50] sm:$0xff] (!%p829_p13) }
  0x52   : > { %948 = vmatprep.subr.bf16.mxu0 (!%p829_p13), %v1220_v34  ;;  %v615_v57 = vld [vmem:[#allocation3 + $0x38] sm:$0xff] (!%p829_p13)  ;;  %v958_v58 = vpack.c.bf16 (!%p829_p13), %v529_v54, %v528_v53  ;;  %v616_v62 = vld [vmem:[#allocation3 + $0x40] sm:$0xff] (!%p829_p13)  ;;  %v617_v63 = vld [vmem:[#allocation3 + $0x48] sm:$0xff] (!%p829_p13) }
  0x53   : > { %v531_v60 = vld [vmem:[%s1527_s4 + $0x58] sm:$0xff] (!%p829_p13)  ;;  %v979_v61 = vpack.c.bf16 (!%p829_p13), %v615_v57, %v614_v56  ;;  %v532_v1 = vld [vmem:[%s1527_s4 + $0x60] sm:$0xff] (!%p829_p13)  ;;  %v533_v2 = vld [vmem:[%s1527_s4 + $0x68] sm:$0xff] (!%p829_p13)  ;;  %v982_v3 = vpack.c.bf16 (!%p829_p13), %v617_v63, %v616_v62 }
  0x54   : > { %974 = vmatpush3.bf16.msra.mxu1 (!%p829_p13), %v973_v49  ;;  %v961_v0 = vpack.c.bf16 (!%p829_p13), %v531_v60, %v530_v59  ;;  %v618_v4 = vld [vmem:[#allocation3 + $0x50] sm:$0xff] (!%p829_p13)  ;;  %v619_v5 = vld [vmem:[#allocation3 + $0x58] sm:$0xff] (!%p829_p13)  ;;  %v964_v6 = vpack.c.bf16 (!%p829_p13), %v533_v2, %v532_v1 }
  0x55   : > { %950 = vmatpush3.bf16.msra.mxu0 (!%p829_p13), %v949_v38  ;;  %975 = vmatprep.subr.bf16.mxu1 (!%p829_p13), %v1220_v34 }
  0x56   : > { %951 = vmatprep.subr.bf16.mxu0 (!%p829_p13), %v1220_v34 }
  0x58   : > { %977 = vmatpush3.bf16.msra.mxu1 (!%p829_p13), %v976_v55 }
  0x59   : > { %953 = vmatpush3.bf16.msra.mxu0 (!%p829_p13), %v952_v45  ;;  %978 = vmatprep.subr.bf16.mxu1 (!%p829_p13), %v1220_v34 }
  0x5a   : > { %954 = vmatprep.subr.bf16.mxu0 (!%p829_p13), %v1220_v34 }
  0x5c   : > { %980 = vmatpush3.bf16.msra.mxu1 (!%p829_p13), %v979_v61 }
  0x5d   : > { %956 = vmatpush3.bf16.msra.mxu0 (!%p829_p13), %v955_v52  ;;  %981 = vmatprep.subr.bf16.mxu1 (!%p829_p13), %v1220_v34 }
  0x5e   : > { %957 = vmatprep.subr.bf16.mxu0 (!%p829_p13), %v1220_v34 }
  0x60   : > { %983 = vmatpush3.bf16.msra.mxu1 (!%p829_p13), %v982_v3 }
  0x61   : > { %959 = vmatpush3.bf16.msra.mxu0 (!%p829_p13), %v958_v58  ;;  %984 = vmatprep.subr.bf16.mxu1 (!%p829_p13), %v1220_v34 }
  0x62   : > { %960 = vmatprep.subr.bf16.mxu0 (!%p829_p13), %v1220_v34 }
  0x65   : > { %962 = vmatpush3.bf16.msra.mxu0 (!%p829_p13), %v961_v0 }
  0x66   : > { %963 = vmatprep.subr.bf16.mxu0 (!%p829_p13), %v1220_v34 }
  0x69   : > { %965 = vmatpush3.bf16.msra.mxu0 (!%p829_p13), %v964_v6 }
  0x6a   : > { %966 = vmatprep.subr.bf16.mxu0 (!%p829_p13), %v1220_v34 }
  0xcb   : > { %v497_v12 = vpop.permute.xlu0 %496 }
  0xcf   : > { %v502_v19 = vpop.permute.xlu0 %501 }
 0x11f   : > { %v874_v8 = vpop.f32.mrb[0].mxu0 }
 0x120   : > { %v484_v9 = vsub.f32 %v828_v7, %v874_v8  ;;  %v467_v10 = vpop.f32.mrb[1].mxu0  ;;  %v535_v8 = vld [vmem:[%s1527_s4 + $0x78] sm:$0xff] (!%p829_p13) }
 0x121   : > { %v483_v11 = vsub.f32 %v828_v7, %v467_v10  ;;  %v534_v7 = vld [vmem:[%s1527_s4 + $0x70] sm:$0xff] (!%p829_p13)  ;;  %v620_v10 = vld [vmem:[#allocation3 + $0x60] sm:$0xff] (!%p829_p13) }
 0x122   : > { %1083 = vtanh.f32 %v484_v9  ;;  %v985_v9 = vpack.c.bf16 (!%p829_p13), %v619_v5, %v618_v4 }
 0x123   : > { %1085 = vtanh.f32 %v483_v11  ;;  %v621_v11 = vld [vmem:[#allocation3 + $0x68] sm:$0xff] (!%p829_p13) }
 0x124   : > { %986 = vmatpush3.bf16.msra.mxu1 (!%p829_p13), %v985_v9 }
 0x125   : > { %987 = vmatprep.subr.bf16.mxu1 (!%p829_p13), %v1220_v34 }
 0x12c   : > { %v1084_v13 = vpop.eup %1083 }
 0x12d   : > { %v1086_v14 = vpop.eup %1085  ;;  %v488_v15 = vmul.f32 0.5, %v1084_v13  ;;  %v988_v13 = vpack.c.bf16 (!%p829_p13), %v621_v11, %v620_v10 }
 0x12e   : > { %v487_v16 = vmul.f32 0.5, %v1086_v14 }
 0x12f   : > { %v490_v17 = vadd.f32 0.5, %v488_v15  ;;  %989 = vmatpush3.bf16.msra.mxu1 (!%p829_p13), %v988_v13  ;;  %v622_v15 = vld [vmem:[#allocation3 + $0x70] sm:$0xff] (!%p829_p13) }
 0x130   : > { %v489_v18 = vadd.f32 0.5, %v487_v16  ;;  %990 = vmatprep.subr.bf16.mxu1 (!%p829_p13), %v1220_v34  ;;  %v623_v16 = vld [vmem:[#allocation3 + $0x78] sm:$0xff] (!%p829_p13) }
 0x131   : > { %v505_v20 = vmul.f32 %v502_v19, %v490_v17  ;;  %v991_v17 = vpack.c.bf16 (!%p829_p13), %v623_v16, %v622_v15 }
 0x132   : > { %v504_v21 = vmul.f32 %v497_v12, %v489_v18  ;;  %v967_v12 = vpack.c.bf16 (!%p829_p13), %v535_v8, %v534_v7  ;;  %v536_v18 = vld [vmem:[%s1528_s5] sm:$0x1] (!%p829_p13) }
 0x133   : > { %992 = vmatpush3.bf16.msra.mxu1 (!%p829_p13), %v991_v17 }
 0x134   : > { %v506_v22 = vadd.f32 %v505_v20, %v504_v21  ;;  %968 = vmatpush3.bf16.msra.mxu0 (!%p829_p13), %v967_v12 }
 0x136   : > { %v507_v23 = vrot.slane %v506_v22, 4 }
 0x138   : > { %v508_v24 = vadd.f32 %v507_v23, %v506_v22  ;;  %v624_v23 = vld [vmem:[%s1530_s7] sm:$0x1] (!%p829_p13) }
 0x13a   : > { %v509_v25 = vrot.slane %v508_v24, 2 }
 0x13c   : > { %v510_v26 = vadd.f32 %v509_v25, %v508_v24 }
 0x13e   : > { %v511_v27 = vrot.slane %v510_v26, 1  ;;  %518 = sbr.rel (%p829_p13) target bundleno = 763 (0x2fb), region = 64 }
 0x140   : > { %v512_v29 = vadd.f32 %v511_v27, %v510_v26 }
 0x142   : > { %v513_v30 = vadd.f32 %v512_v29, %v491_v28 }
 0x144   : > { %514 = vst [vmem:[#allocation2] sm:$0x1] %v513_v30 }
 0x14b   : > { %v519_v14 = vld [vmem:[#allocation2] sm:$0x1] }
 0x14c   : > { %908 = vmatmul.mubr.f32.vlgmr.msra.gmra.mrb[0].mxu0 %v519_v14 }
 0x21f   : > { %v603_v19 = vpop.f32.mrb[0].mxu0 }
 0x220   : > { %v604_v20 = vadd.f32 %v603_v19, %v536_v18  ;;  %v909_v21 = vpop.f32.mrb[1].mxu0 }
 0x222   : > { %v607_v22 = vmax.f32 %v604_v20, 0.0 }
 0x224   : > { %943 = vmatmul.mubr.f32.vlgmr.msra.gmra.mrb[0].mxu1 %v607_v22 }
 0x2f7   : > { %v691_v24 = vpop.f32.mrb[0].mxu1 }
 0x2f8   : > { %v692_v25 = vadd.f32 %v691_v24, %v624_v23  ;;  %v944_v26 = vpop.f32.mrb[1].mxu1 }
 0x2fa   : > { %695 = vst [vmem:[%s1388_s6] sm:$0x1] %v692_v25 }
 0x2fb PF: > { %s830_s17 = sshll.u32 %s1201_s9, 4  ;;  %s709_s22 = sshll.u32 %s1388_s6, 4  ;;  %s710_s22 = int_to_ptr.vmem [resolvable:$true] %s709_s22 }
 0x2fc   : > { %s1473_s14 = scalar_lea.hbm %s1531_s8, %s830_s17  ;;  %s697_s21 = scalar_lea.sflag [#allocation5], %s360_s11 }
 0x2fd   : > { %s1115_s13 = scalar_lea.vmem %s710_s22, 16  ;;  %p1550_p2 = scmp.ne.s32.totalorder %s1541_s18, 0 }
 0x2fe   : > { %p1116_p0 = scmp.ne.s32.totalorder %s710_s22, %s1115_s13  ;;  %s1223_s26 = smov [#allocation6]  }
 0x2ff   : > { %s1119_s30 = sshll.u32 %s1223_s26, 4  ;;  %s1120_s30 = int_to_ptr.vmem [resolvable:$false] %s1119_s30 }
 0x300   : > { %p1117_p5 = pnand %p1116_p0, %p1550_p2  ;;  %s1121_s16 = scalar_lea.vmem %s1120_s30, 32 }
 0x301   : > { %p1122_p7 = scmp.lt.s32.totalorder %s710_s22, %s1120_s30  ;;  %p1123_p8 = scmp.lt.s32.totalorder %s1121_s16, %s1115_s13 }
 0x302   : > { %p1118_p6 = pneg %p1117_p5 }
 0x303   : > { %p1124_p11 = por %p1123_p8, %p1122_p7 }
 0x305   : > { %p1125_p12 = pnand %p1124_p11, %p1118_p6 }
 0x307   : > { %1128 = shalt.err (!%p1125_p12)
}
 0x308   : > { %s1129_s6 = scalar_lea.hbm %s1473_s14, 16  ;;  %s1133_s25 = scalar_lea.hbm %s1531_s8, 32 }
 0x309   : > { %p1130_p1 = scmp.ne.s32.totalorder %s1473_s14, %s1129_s6  ;;  %p1134_p9 = scmp.lt.u32.totalorder %s1473_s14, %s1531_s8 }
 0x30a   : > { %p1135_p10 = scmp.lt.u32.totalorder %s1133_s25, %s1129_s6  ;;  %p1137_p0 = scmp.lt.u32.totalorder %s1129_s6, %s1473_s14 }
 0x30b   : > { %p1131_p4 = pnand %p1130_p1, %p1550_p2 }
 0x30c   : > { %p1136_p13 = por %p1135_p10, %p1134_p9 }
 0x30d   : > { %p1132_p3 = pneg %p1131_p4 }
 0x30e   : > { %p1138_p5 = por %p1137_p0, %p1136_p13 }
 0x310   : > { %p1139_p6 = pnand %p1138_p5, %p1132_p3 }
 0x312   : > { %1142 = shalt.err (!%p1139_p6)
}
 0x313   : > { %997 = dma.vmem_to_hbm [thread:$0]  (%p1550_p2), %s710_s22, 16, %s1473_s14, %s697_s21  }
 0x314 PF: > { %p1009_p7 = scmp.ge.s32.totalorder %s1213_s12, 2  ;;  %s721_s24 = sand.u32 1, %s1185_s27  }
 0x315   : > { %p1551_p8 = scmp.ne.s32.totalorder %s1543_s19, 0  ;;  %s722_s15 = scalar_lea.sflag [#allocation5], %s721_s24 }
 0x317   : > { %p1004_p11 = pnand %p1009_p7, %p1551_p8 }
 0x319   : > { %1180 = dma.done.wait (!%p1004_p11), %s722_s15, 16  }
 0x31a   : > { %1182 = vsyncadd (!%p1004_p11), %s722_s15, 4294967280  ;;  %s22_s12 = sadd.s32 1, %s1213_s12   ;;  %s1552_s9 = sld [smem:[#allocation9_spill]] }
 0x31b   : > { %p19_p12 = scmp.ge.s32.totalorder %s22_s12, 6   ;;  %s1553_s18 = sld [smem:[#allocation10_spill]] }
 0x31c   : > { %s1554_s11 = sld [smem:[#allocation11_spill]]  ;;  %s1555_s27 = smov %s1189_s28 }
 0x31d   : > { %s1556_s28 = smov %s1193_s29  ;;  %s1557_s29 = smov %s1346_s23 }
 0x31e   : > { %s1558_s30 = smov %s1205_s10  ;;  %21 = sbr.rel (!%p19_p12) target bundleno = 8 (0x8), region = 103 }
 0x321   : > { %s1559_s10 = smov %s1553_s18 }
 0x325   :  { %726 = vsyncpa [#allocation4], 1 }
 0x326   :  { %728 = vsyncpa [#allocation4 + $0x1], 1 }
 0x327   :  { %729 = vsyncpa [#allocation5], 1 }
 0x328   :  { %731 = vsyncpa [#allocation5 + $0x1], 1 }

</bundles_post_ra>
